<compile_context>
chip_gen: v6e
topology: v6e:2x2x1
jax: 0.10.0
libtpu: 0.0.40
codegen_flags: <defaults>
</compile_context>

<pallas_src>
import jax
import jax.numpy as jnp
from jax.experimental import pallas as pl
from jax.experimental.pallas import tpu as pltpu


# --------------------------------------------------------------------------- #
# Kernel
# --------------------------------------------------------------------------- #
def _multi_noise_loss_kernel(losses_ref, sigma_ref, out_ref):
    # losses_ref: (1, n) f32 VMEM
    # sigma_ref : (1, n) f32 VMEM
    # out_ref   : (1, 1) f32 SMEM  -- scalar total loss
    losses = losses_ref[...]                              # (1, n)
    sigma = sigma_ref[...]                                 # (1, n)
    inv_var = pl.reciprocal(sigma * sigma, approx=False)   # exact 1/sigma^2 (EUP)
    weighted = losses * inv_var + jnp.log(sigma)           # VPU mul/add + EUP log
    out_ref[0, 0] = jnp.sum(weighted)                      # XLU reduce -> scalar


def _multi_noise_loss_pallas(losses, noise_params):
    """losses: (n,) f32, noise_params: (n,) f32 -> scalar f32 (Pallas forward)."""
    n = losses.shape[0]
    # Reshape to (1, n): zero-cost metadata change (no HBM copy), lane-contiguous
    # layout inside the kernel. No jnp.stack / concatenate.
    losses_2d = jnp.reshape(losses, (1, n))
    sigma_2d = jnp.reshape(noise_params, (1, n))

    out = pl.pallas_call(
        _multi_noise_loss_kernel,
        out_shape=jax.ShapeDtypeStruct((1, 1), jnp.float32),
        in_specs=[
            pl.BlockSpec(memory_space=pltpu.MemorySpace.VMEM),
            pl.BlockSpec(memory_space=pltpu.MemorySpace.VMEM),
        ],
        out_specs=pl.BlockSpec(memory_space=pltpu.MemorySpace.SMEM),
        cost_estimate=pl.CostEstimate(
            flops=3 * n, transcendentals=2 * n, bytes_accessed=8 * n + 4
        ),
        compiler_params=pltpu.CompilerParams(vmem_limit_bytes=1 << 20),
    )(losses_2d, sigma_2d)
    # Return a 0-d scalar.
    return jnp.reshape(out, ())


# --------------------------------------------------------------------------- #
# Differentiable wrapper (custom VJP so noise_params stay trainable)
# --------------------------------------------------------------------------- #
@jax.custom_vjp
def multi_noise_loss(losses, noise_params):
    return _multi_noise_loss_pallas(losses, noise_params)


def _mnl_fwd(losses, noise_params):
    out = _multi_noise_loss_pallas(losses, noise_params)
    return out, (losses, noise_params)


def _mnl_bwd(residuals, g):
    # Plain jnp backward: a handful of elementwise ops on (n,) vectors; fuses into
    # the surrounding grad graph for free.
    losses, sigma = residuals
    # d/dloss_i  = 1/sigma_i^2
    # d/dsigma_i = -2*loss_i/sigma_i^3 + 1/sigma_i
    d_losses = g / jnp.square(sigma)
    d_sigma = g * (-2.0 * losses / (sigma * sigma * sigma) + 1.0 / sigma)
    return d_losses, d_sigma


multi_noise_loss.defvjp(_mnl_fwd, _mnl_bwd)


# --------------------------------------------------------------------------- #
# Pure-JAX reference (mirrors the PyTorch forward loop, vectorized)
# --------------------------------------------------------------------------- #
def multi_noise_loss_ref(losses, noise_params):
    return jnp.sum(losses / jnp.square(noise_params) + jnp.log(noise_params))


if __name__ == "__main__":
    n_losses = 4
    key = jax.random.PRNGKey(0)
    k_param, k_loss = jax.random.split(key)

    # nn.Parameter(torch.rand(n_losses)) -> uniform (0, 1); keep sigma > 0.
    # TODO(synk): the raw-sigma parameterization (like the PyTorch module) can be
    # driven non-positive during training; a log-variance parameterization is the
    # numerically safe form, but we mirror the original module here.
    noise_params = jax.random.uniform(
        k_param, (n_losses,), dtype=jnp.float32, minval=0.05, maxval=1.0
    )
    # Synthetic per-task classification losses (non-negative scalars).
    losses = jax.random.uniform(
        k_loss, (n_losses,), dtype=jnp.float32, minval=0.0, maxval=2.0
    )

    out = multi_noise_loss(losses, noise_params)
    jax.block_until_ready(out)

    ref = multi_noise_loss_ref(losses, noise_params)
    # Exact reciprocal restores tight tolerance (previous approx path needed 5e-3).
    assert jnp.allclose(out, ref, rtol=1e-5, atol=1e-6), (out, ref)

    # Gradient sanity check (custom VJP uses the exact analytic backward).
    g_kernel = jax.grad(multi_noise_loss, argnums=(0, 1))(losses, noise_params)
    g_ref = jax.grad(multi_noise_loss_ref, argnums=(0, 1))(losses, noise_params)
    assert jnp.allclose(g_kernel[0], g_ref[0], rtol=1e-5, atol=1e-5)
    assert jnp.allclose(g_kernel[1], g_ref[1], rtol=1e-5, atol=1e-5)

    print("KERNEL_OK")
</pallas_src>

<mosaic_0001>
module attributes {stable_mosaic.version = 11 : i64} {
  func.func @_multi_noise_loss_kernel(%arg0: memref<1x4xf32, #tpu.memory_space<vmem>>, %arg1: memref<1x4xf32, #tpu.memory_space<vmem>>, %arg2: memref<1x1xf32, #tpu.memory_space<smem>>) attributes {dimension_semantics = [], scalar_prefetch = 0 : i64, scratch_operands = 0 : i64, tpu.core_type = #tpu.core_type<tc>} {
    %c0 = arith.constant 0 : index
    %c0_0 = arith.constant 0 : index
    %0 = vector.load %arg0[%c0, %c0_0] : memref<1x4xf32, #tpu.memory_space<vmem>>, vector<1x4xf32>
    %c0_1 = arith.constant 0 : index
    %c0_2 = arith.constant 0 : index
    %1 = vector.load %arg1[%c0_1, %c0_2] : memref<1x4xf32, #tpu.memory_space<vmem>>, vector<1x4xf32>
    %2 = arith.mulf %1, %1 : vector<1x4xf32>
    %3 = tpu.reciprocal %2 : vector<1x4xf32> -> vector<1x4xf32>
    %4 = arith.mulf %0, %3 : vector<1x4xf32>
    %5 = math.log %1 : vector<1x4xf32>
    %6 = arith.addf %4, %5 : vector<1x4xf32>
    %7 = vector.shape_cast %6 : vector<1x4xf32> to vector<1x1x4xf32>
    %cst = arith.constant dense<0.000000e+00> : vector<1xf32>
    %8 = vector.multi_reduction <add>, %7, %cst [1, 2] : vector<1x1x4xf32> to vector<1xf32>
    %9 = vector.shape_cast %8 : vector<1xf32> to vector<1x1x1xf32>
    %10 = vector.extract %9[0, 0, 0] : f32 from vector<1x1x1xf32>
    %c0_3 = arith.constant 0 : index
    %c0_4 = arith.constant 0 : index
    %11 = memref.load %arg2[%c0_3, %c0_4] : memref<1x1xf32, #tpu.memory_space<smem>>
    memref.store %10, %arg2[%c0_3, %c0_4] : memref<1x1xf32, #tpu.memory_space<smem>>
    return
  }
}

</mosaic_0001>

<bundles_post_ra>
// kernel: tpu_custom_call.1
= control target key start
LH: loop header
LB: loop body
LE: loop exit
PB: predicated region body
PF: predicated region fallthrough
CT: control target
= control target key end

     0   :  { %7 = vsyncpa [#allocation3], 0  ;;  %s125_s0 = inlined_call_operand.hbm [shape: f32[1,4], index: 0, kind: input, shape index: {}]   ;;  %s126_s1 = inlined_call_operand.vmem [shape: f32[1,4], index: 1, kind: input, shape index: {}]   ;;  %s127_s2 = inlined_call_operand.hbm [shape: f32[1,1], index: 2, kind: output, shape index: {}]  }
   0x1   :  { %8 = vsyncpa [#allocation4], 0  ;;  %s99_s9 = smov [#allocation2]  }
   0x2   :  { %s15_s10 = sshll.u32 %s99_s9, 4  ;;  %s16_s10 = int_to_ptr.vmem [resolvable:$true] %s15_s10 }
   0x3   :  { %s75_s11 = scalar_lea.vmem %s16_s10, 16  ;;  %s79_s12 = scalar_lea.vmem %s16_s10, 32 }
   0x4   :  { %p76_p0 = scmp.ne.s32.totalorder %s16_s10, %s75_s11  ;;  %p80_p1 = scmp.lt.s32.totalorder %s16_s10, %s16_s10 }
   0x5   :  { %p81_p2 = scmp.lt.s32.totalorder %s79_s12, %s75_s11 }
   0x7   :  { %p82_p3 = por %p81_p2, %p80_p1 }
   0x9   :  { %p83_p4 = pnand %p82_p3, %p76_p0 }
   0xb   :  { %86 = shalt.err (!%p83_p4)
}
   0xc   :  { %18 = dma.hbm_to_vmem [thread:$0]  %s125_s0, 16, %s16_s10, [#allocation3]  }
   0xd   :  { %95 = dma.done.wait [#allocation3], 16  }
   0xe   :  { %96 = vsyncadd [#allocation3], 4294967280  ;;  %v25_v0 = vld [vmem:[%s126_s1] sm:$0x1]  ;;  %vm32_vm0 = vcmask 24576   ;;  %s100_s1 = smov [#allocation5]  }
   0xf   :  { %v26_v1 = vmul.f32 %v25_v0, %v25_v0  ;;  %63 = vlog2.f32 %v25_v0  ;;  %v24_v3 = vld [vmem:[#allocation2] sm:$0x1] }
  0x11   :  { %65 = vrcp.f32 %v26_v1 }
  0x1c   :  { %v64_v2 = vpop.eup %63 }
  0x1d   :  { %v30_v4 = vmul.f32 0.6931472, %v64_v2 }
  0x1e   :  { %v66_v5 = vpop.eup %65 }
  0x1f   :  { %v28_v6 = vmul.f32 %v66_v5, %v24_v3 }
  0x21   :  { %v31_v7 = vadd.f32 %v30_v4, %v28_v6 }
  0x23   :  { %v33_v8 = vsel %vm32_vm0, %v31_v7, 0.0 }
  0x24   :  { %34 = vadd.xlane.f32.xlu0 %v33_v8 }
  0xad   :  { %v35_v9 = vpop.xlane.xlu0 %34 }
  0xae   :  { %v36_v10 = vrot.slane %v35_v9, 4 }
  0xb0   :  { %v37_v11 = vadd.f32 %v36_v10, %v35_v9 }
  0xb2   :  { %v38_v12 = vrot.slane %v37_v11, 2 }
  0xb4   :  { %v39_v13 = vadd.f32 %v38_v12, %v37_v11 }
  0xb6   :  { %v40_v14 = vrot.slane %v39_v13, 1 }
  0xb8   :  { %v41_v15 = vadd.f32 %v40_v14, %v39_v13 }
  0xba   :  { %59 = vpush %v41_v15 }
  0xeb   :  { %s60_s0 = spop %59 }
  0xec   :  { %44 = sst [smem:[#allocation5]] %s60_s0 }
  0xed   :  { %52 = dma.smem_to_hbm %s100_s1, 16, %s127_s2, [#allocation4]  }
  0xee   :  { %97 = dma.done.wait [#allocation4], 16  }
  0xef   :  { %98 = vsyncadd [#allocation4], 4294967280 }
  0xf0   :  { %56 = sfence }
  0xf1   :  { %57 = vsyncpa [#allocation3], 1 }
  0xf2   :  { %58 = vsyncpa [#allocation4], 1 }

</bundles_post_ra>
